<compile_context>
chip_gen: v7x
topology: tpu7x:2x2x1
jax: 0.10.0
libtpu: 0.0.40
codegen_flags: <defaults>
</compile_context>

<pallas_src>
import functools

import jax
import jax.numpy as jnp
from jax.experimental import pallas as pl
from jax.experimental.pallas import tpu as pltpu


def _moving_avg_kernel(x_ref, o_ref, xpad_ref, *, kernel_size, front_pad, end_pad):
    # x_ref   : (L, Ct)  input tile (one batch element, one channel tile)
    # o_ref   : (L, Ct)  dense (stride-1) moving-average output tile
    # xpad_ref: (L + K - 1, Ct) VMEM scratch holding the replicate-padded tile
    L, Ct = x_ref.shape
    Lout = o_ref.shape[0]  # == L for the dense formulation

    x = x_ref[...]

    # --- Build the replicate-padded tile in VMEM (padding never touches HBM). ---
    xpad_ref[pl.ds(front_pad, L), :] = x
    if front_pad > 0:
        xpad_ref[pl.ds(0, front_pad), :] = jnp.broadcast_to(x[0:1, :], (front_pad, Ct))
    if end_pad > 0:
        xpad_ref[pl.ds(front_pad + L, end_pad), :] = jnp.broadcast_to(
            x[L - 1:L, :], (end_pad, Ct)
        )

    # --- Hot path: windowed sum along time, accumulated in f32 on the VPU. ---
    # kernel_size is a Python int -> the loop is unrolled at trace time.
    acc = xpad_ref[pl.ds(0, Lout), :].astype(jnp.float32)
    for k in range(1, kernel_size):
        acc = acc + xpad_ref[pl.ds(k, Lout), :].astype(jnp.float32)

    o_ref[...] = (acc * (1.0 / kernel_size)).astype(o_ref.dtype)


def _pick_tile_c(C, L):
    """Channel tile: a multiple of 128 lanes when C allows, sized so the per-block
    f32 working set stays ~<= 2 MiB (safe for v7x's 64 MiB VMEM)."""
    if C % 128 != 0:
        return C  # small / ragged C: use the full dim (allowed by Mosaic).
    budget = 2 * 1024 * 1024
    for cand in (1024, 512, 256, 128):
        if C % cand == 0 and L * cand * 4 <= budget:
            return cand
    return 128


def moving_avg(x, kernel_size, stride=1):
    """JAX/Pallas equivalent of the PyTorch `moving_avg` module.

    x: (B, L, C).  Returns (B, Lout, C) with
    Lout = (L + kernel_size - 1 - kernel_size) // stride + 1,
    matching replicate-pad (front = K-1-(K-1)//2, end = (K-1)//2) + AvgPool1d(K, stride).
    """
    B, L, C = x.shape
    front_pad = kernel_size - 1 - (kernel_size - 1) // 2
    end_pad = (kernel_size - 1) // 2
    Lp = L + kernel_size - 1

    tile_c = _pick_tile_c(C, L)
    grid = (B, C // tile_c)

    kernel = functools.partial(
        _moving_avg_kernel,
        kernel_size=kernel_size,
        front_pad=front_pad,
        end_pad=end_pad,
    )

    # Explicit scoped-VMEM budget: double-buffered in/out blocks + padded scratch
    # + f32 working set, with headroom.  Clamped well under v7x's 64 MiB physical.
    itemsize = x.dtype.itemsize
    block_bytes = L * tile_c * itemsize
    scratch_bytes = Lp * tile_c * itemsize
    f32_work = 2 * L * tile_c * 4
    vmem_needed = 2 * 2 * block_bytes + scratch_bytes + f32_work
    vmem_limit = int(min(max(2 * vmem_needed, 32 * 1024 * 1024), 48 * 1024 * 1024))

    dense = pl.pallas_call(
        kernel,
        out_shape=jax.ShapeDtypeStruct((B, L, C), x.dtype),
        grid=grid,
        # Leading batch dim is squeezed (None) -> kernel sees 2-D (L, tile_c) refs.
        in_specs=[pl.BlockSpec((None, L, tile_c), lambda b, c: (b, 0, c))],
        out_specs=pl.BlockSpec((None, L, tile_c), lambda b, c: (b, 0, c)),
        scratch_shapes=[pltpu.VMEM((Lp, tile_c), x.dtype)],
        compiler_params=pltpu.CompilerParams(
            dimension_semantics=("parallel", "parallel"),
            vmem_limit_bytes=vmem_limit,
        ),
    )(x)

    if stride == 1:
        return dense
    # stride > 1: dense stride-1 result subsampled on the time axis (keeps the
    # in-kernel loads dense/aligned; length matches AvgPool1d exactly).
    return dense[:, ::stride, :]


def _reference(x, kernel_size, stride):
    # Pure-JAX reference mirroring the PyTorch semantics (sanity check).
    front_pad = kernel_size - 1 - (kernel_size - 1) // 2
    end_pad = (kernel_size - 1) // 2
    front = jnp.repeat(x[:, 0:1, :], front_pad, axis=1)
    end = jnp.repeat(x[:, -1:, :], end_pad, axis=1)
    xp = jnp.concatenate([front, x, end], axis=1)
    Lp = xp.shape[1]
    Lout = (Lp - kernel_size) // stride + 1
    outs = []
    for t in range(Lout):
        outs.append(
            jnp.mean(xp[:, t * stride:t * stride + kernel_size, :], axis=1)
        )
    return jnp.stack(outs, axis=1)


if __name__ == "__main__":
    key = jax.random.PRNGKey(0)

    # Case 1: module's typical use (odd K, stride 1): x (B, L, C) = (2, 8, 32).
    B, L, C = 2, 8, 32
    kernel_size, stride = 5, 1
    x = jax.random.normal(key, (B, L, C), dtype=jnp.float32)
    out = jax.block_until_ready(moving_avg(x, kernel_size, stride))
    ref = _reference(x, kernel_size, stride)
    assert out.shape == ref.shape, (out.shape, ref.shape)
    assert jnp.allclose(out, ref, atol=1e-5, rtol=1e-5), "mismatch vs reference (case 1)"

    # Case 2: exercises the lane-dense channel tiling (C multiple of 128) and stride > 1.
    B2, L2, C2 = 2, 16, 256
    k2, s2 = 7, 2
    x2 = jax.random.normal(jax.random.PRNGKey(0), (B2, L2, C2), dtype=jnp.float32)
    out2 = jax.block_until_ready(moving_avg(x2, k2, s2))
    ref2 = _reference(x2, k2, s2)
    assert out2.shape == ref2.shape, (out2.shape, ref2.shape)
    assert jnp.allclose(out2, ref2, atol=1e-5, rtol=1e-5), "mismatch vs reference (case 2)"

    print("KERNEL_OK")
</pallas_src>

<mosaic_0001>
module attributes {stable_mosaic.version = 11 : i64} {
  func.func @_moving_avg_kernel(%arg0: i32, %arg1: i32, %arg2: memref<1x8x32xf32, #tpu.memory_space<vmem>>, %arg3: memref<1x8x32xf32, #tpu.memory_space<vmem>>, %arg4: memref<12x32xf32, #tpu.memory_space<vmem>>) attributes {dimension_semantics = [#tpu.dimension_semantics<parallel>, #tpu.dimension_semantics<parallel>], iteration_bounds = array<i64: 2, 1>, scalar_prefetch = 0 : i64, scratch_operands = 1 : i64, tpu.core_type = #tpu.core_type<tc>, window_params = [{transform_indices = @transform_0, window_bounds = array<i64: 1, 8, 32>}, {transform_indices = @transform_1, window_bounds = array<i64: 1, 8, 32>}]} {
    %c0 = arith.constant 0 : index
    %c0_0 = arith.constant 0 : index
    %c0_1 = arith.constant 0 : index
    %0 = vector.load %arg2[%c0, %c0_0, %c0_1] : memref<1x8x32xf32, #tpu.memory_space<vmem>>, vector<1x8x32xf32>
    %1 = vector.shape_cast %0 : vector<1x8x32xf32> to vector<8x32xf32>
    %c2 = arith.constant 2 : index
    %c0_2 = arith.constant 0 : index
    %2 = vector.load %arg4[%c2, %c0_2] : memref<12x32xf32, #tpu.memory_space<vmem>>, vector<8x32xf32>
    tpu.vector_store %arg4[%c2, %c0_2], %1 {strides = array<i32>} : memref<12x32xf32, #tpu.memory_space<vmem>>, vector<8x32xf32>,
    %3 = vector.extract_strided_slice %1 {offsets = [0, 0], sizes = [1, 32], strides = [1, 1]} : vector<8x32xf32> to vector<1x32xf32>
    %4 = vector.shape_cast %3 : vector<1x32xf32> to vector<1x32xf32>
    %5 = vector.broadcast %4 : vector<1x32xf32> to vector<2x32xf32>
    %c0_3 = arith.constant 0 : index
    %c0_4 = arith.constant 0 : index
    %6 = vector.load %arg4[%c0_3, %c0_4] : memref<12x32xf32, #tpu.memory_space<vmem>>, vector<2x32xf32>
    tpu.vector_store %arg4[%c0_3, %c0_4], %5 {strides = array<i32>} : memref<12x32xf32, #tpu.memory_space<vmem>>, vector<2x32xf32>,
    %7 = vector.extract_strided_slice %1 {offsets = [7, 0], sizes = [1, 32], strides = [1, 1]} : vector<8x32xf32> to vector<1x32xf32>
    %8 = vector.shape_cast %7 : vector<1x32xf32> to vector<1x32xf32>
    %9 = vector.broadcast %8 : vector<1x32xf32> to vector<2x32xf32>
    %c10 = arith.constant 10 : index
    %c0_5 = arith.constant 0 : index
    %10 = vector.load %arg4[%c10, %c0_5] : memref<12x32xf32, #tpu.memory_space<vmem>>, vector<2x32xf32>
    tpu.vector_store %arg4[%c10, %c0_5], %9 {strides = array<i32>} : memref<12x32xf32, #tpu.memory_space<vmem>>, vector<2x32xf32>,
    %c0_6 = arith.constant 0 : index
    %c0_7 = arith.constant 0 : index
    %11 = vector.load %arg4[%c0_6, %c0_7] : memref<12x32xf32, #tpu.memory_space<vmem>>, vector<8x32xf32>
    %c1 = arith.constant 1 : index
    %c0_8 = arith.constant 0 : index
    %12 = vector.load %arg4[%c1, %c0_8] : memref<12x32xf32, #tpu.memory_space<vmem>>, vector<8x32xf32>
    %13 = arith.addf %11, %12 : vector<8x32xf32>
    %c2_9 = arith.constant 2 : index
    %c0_10 = arith.constant 0 : index
    %14 = vector.load %arg4[%c2_9, %c0_10] : memref<12x32xf32, #tpu.memory_space<vmem>>, vector<8x32xf32>
    %15 = arith.addf %13, %14 : vector<8x32xf32>
    %c3 = arith.constant 3 : index
    %c0_11 = arith.constant 0 : index
    %16 = vector.load %arg4[%c3, %c0_11] : memref<12x32xf32, #tpu.memory_space<vmem>>, vector<8x32xf32>
    %17 = arith.addf %15, %16 : vector<8x32xf32>
    %c4 = arith.constant 4 : index
    %c0_12 = arith.constant 0 : index
    %18 = vector.load %arg4[%c4, %c0_12] : memref<12x32xf32, #tpu.memory_space<vmem>>, vector<8x32xf32>
    %19 = arith.addf %17, %18 : vector<8x32xf32>
    %cst = arith.constant 2.000000e-01 : f32
    %20 = vector.broadcast %cst : f32 to vector<8x32xf32>
    %21 = arith.mulf %19, %20 : vector<8x32xf32>
    %c0_13 = arith.constant 0 : index
    %c0_14 = arith.constant 0 : index
    %c0_15 = arith.constant 0 : index
    %22 = vector.load %arg3[%c0_13, %c0_14, %c0_15] : memref<1x8x32xf32, #tpu.memory_space<vmem>>, vector<1x8x32xf32>
    %23 = vector.shape_cast %22 : vector<1x8x32xf32> to vector<8x32xf32>
    %24 = vector.shape_cast %21 : vector<8x32xf32> to vector<1x8x32xf32>
    tpu.vector_store %arg3[%c0_13, %c0_14, %c0_15], %24 {strides = array<i32>} : memref<1x8x32xf32, #tpu.memory_space<vmem>>, vector<1x8x32xf32>,
    return
  }
  func.func @transform_0(%arg0: i32, %arg1: i32) -> (i32, i32, i32) {
    %c0_i32 = arith.constant 0 : i32
    %c0_i32_0 = arith.constant 0 : i32
    return %arg0, %c0_i32, %arg1 : i32, i32, i32
  }
  func.func @transform_1(%arg0: i32, %arg1: i32) -> (i32, i32, i32) {
    %c0_i32 = arith.constant 0 : i32
    %c0_i32_0 = arith.constant 0 : i32
    return %arg0, %c0_i32, %arg1 : i32, i32, i32
  }
}

</mosaic_0001>

<bundles_post_ra>
// kernel: tpu_custom_call.1
= control target key start
LH: loop header
LB: loop body
LE: loop exit
PB: predicated region body
PF: predicated region fallthrough
CT: control target
= control target key end

     0   :  { %6 = vsyncpa [#allocation4], 0  ;;  %s644_s0 = inlined_call_operand.hbm [shape: f32[2,8,32], index: 0, kind: input, shape index: {}]   ;;  %s645_s1 = inlined_call_operand.hbm [shape: f32[2,8,32], index: 1, kind: output, shape index: {}]  }
   0x1   :  { %8 = vsyncpa [#allocation4 + $0x1], 0 }
   0x2   :  { %9 = vsyncpa [#allocation5], 0 }
   0x3   :  { %11 = vsyncpa [#allocation5 + $0x1], 0  ;;  %s470_s6 = smov 0   ;;  %s472_s7 = smov 0  }
   0x4   :  { %s474_s8 = smov 0   ;;  %s476_s9 = smov 0  }
   0x5   :  { %s478_s10 = smov 0   ;;  %s480_s11 = smov 0  }
   0x6 LB: > { %s269_s12 = sadd.s32 4294967295, %s456_s11   ;;  %s270_s13 = sadd.s32 4294967294, %s456_s11   ;;  %s456_s11 = sphi %s480_s11, %s17_s11   ;;  %s452_s10 = sphi %s478_s10, %s661_s10   ;;  %s448_s9 = sphi %s476_s9, %s660_s9   ;;  %s444_s8 = sphi %s474_s8, %s659_s8   ;;  %s440_s7 = sphi %s472_s7, %s658_s7   ;;  %s436_s6 = sphi %s470_s6, %s657_s6  }
   0x7   : > { %s29_s14 = sadd.s32 1, %s452_s10  ;;  %s38_s15 = sadd.s32 1, %s444_s8 }
   0x8   : > { %p31_p0 = scmp.ge.s32.totalorder %s29_s14, 2  ;;  %p45_p1 = scmp.ne.s32.totalorder %s444_s8, %s440_s7 }
   0x9   : > { %p46_p2 = scmp.eq.s32.totalorder %s456_s11, 0  ;;  %p51_p3 = scmp.ne.s32.totalorder %s440_s7, %s436_s6 }
   0xa   : > { %s663_s14 = smov (%p31_p0, %s29_s14), 0  ;;  %p52_p5 = scmp.eq.s32.totalorder %s269_s12, 0 }
   0xb   : > { %p511_p4 = por %p46_p2, %p45_p1  ;;  %s33_s17 = ssub.s32 %s452_s10, %s663_s14 }
   0xc   : > { %p77_p6 = scmp.eq.s32.totalorder %s269_s12, 1  ;;  %p36_p7 = scmp.eq.s32.totalorder %s33_s17, 0 }
   0xd   : > { %p517_p8 = por %p52_p5, %p51_p3  ;;  %p83_p10 = scmp.eq.s32.totalorder %s270_s13, 1 }
   0xe   : > { %p521_p9 = por %p77_p6, %p45_p1  ;;  %p294_p13 = scmp.lt.s32.totalorder %s456_s11, 2 }
   0xf   : > { %s526_s20 = scalar_select %p36_p7, %s444_s8, %s38_s15  }
  0x10   : > { %s649_s19 = scalar_select %p521_p9, 1, 0 }
  0x11   : > { %p528_p11 = por %p83_p10, %p51_p3  ;;  %s103_s22 = sand.u32 1, %s444_s8  }
  0x12   : > { %s273_s23 = sshll.u32 %s103_s22, 3  ;;  %s274_s24 = sshll.u32 %s452_s10, 7 }
  0x13   : > { %s650_s21 = scalar_select %p528_p11, 1, 0 }
  0x14   : > { %s539_s27 = scalar_lea.hbm %s644_s0, %s274_s24  ;;  %s107_s28 = scalar_lea.vmem [#allocation3], %s273_s23 }
  0x15   : > { %s115_s29 = sshll.u32 %s107_s28, 4  ;;  %p545_p0 = pnand %p294_p13, %p511_p4  ;;  %s541_s29 = int_to_ptr.vmem [resolvable:$true] %s115_s29 }
  0x16   : > { %s104_s2 = scalar_lea.sflag [#allocation4], %s103_s22  ;;  %s344_s3 = scalar_lea.hbm %s539_s27, 128 }
  0x17   : > { %p345_p3 = scmp.ne.s32.totalorder %s539_s27, %s344_s3  ;;  %p346_p5 = pneg %p545_p0 }
  0x18   : > { %s349_s12 = scalar_lea.hbm %s644_s0, 256  ;;  %p350_p4 = scmp.lt.u32.totalorder %s539_s27, %s644_s0 }
  0x19   : > { %p347_p6 = pnand %p346_p5, %p345_p3  ;;  %p351_p10 = scmp.lt.u32.totalorder %s349_s12, %s344_s3 }
  0x1a   : > { %p353_p12 = scmp.lt.u32.totalorder %s344_s3, %s539_s27 }
  0x1b   : > { %p348_p7 = pneg %p347_p6  ;;  %p352_p13 = por %p351_p10, %p350_p4 }
  0x1d   : > { %p354_p1 = por %p353_p12, %p352_p13 }
  0x1f   : > { %p355_p2 = pnand %p354_p1, %p348_p7 }
  0x21   : > { %358 = shalt.err (!%p355_p2)
}
  0x22   : > { %s359_s16 = scalar_lea.vmem %s541_s29, 128  ;;  %s458_s17 = smov [#allocation3]  }
  0x23   : > { %p360_p3 = scmp.ne.s32.totalorder %s541_s29, %s359_s16  ;;  %s364_s22 = sshll.u32 %s458_s17, 4  ;;  %s365_s22 = int_to_ptr.vmem [resolvable:$false] %s364_s22 }
  0x24   : > { %s366_s23 = scalar_lea.vmem %s365_s22, 256  ;;  %p367_p9 = scmp.lt.s32.totalorder %s541_s29, %s365_s22 }
  0x25   : > { %p362_p6 = pnand %p360_p3, %p346_p5  ;;  %p368_p4 = scmp.lt.s32.totalorder %s366_s23, %s359_s16 }
  0x27   : > { %p363_p11 = pneg %p362_p6  ;;  %p369_p10 = por %p368_p4, %p367_p9 }
  0x29   : > { %p370_p12 = pnand %p369_p10, %p363_p11 }
  0x2b   : > { %373 = shalt.err (!%p370_p12)
}
  0x2c   : > { %289 = dma.hbm_to_vmem [thread:$0]  (!%p545_p0), %s539_s27, 128, %s541_s29, %s104_s2  }
  0x2d   : > { %p652_p1 = scmp.lt.s32.totalorder %s456_s11, 3  ;;  %p653_p2 = scmp.ge.s32.totalorder %s456_s11, 1 }
  0x2f   : > { %p121_p5 = pnand %p653_p2, %p652_p1 }
  0x30   : > { %s581_s24 = sand.u32 (!%p121_p5), 1, %s440_s7  }
  0x31   : > { %124 = sbr.rel (%p121_p5) target bundleno = 98 (0x62), region = 24  ;;  %s276_s25 = sshll.u32 (!%p121_p5), %s581_s24, 3 }
  0x32   : > { %s127_s26 = scalar_lea.sflag (!%p121_p5), [#allocation4], %s581_s24  ;;  %s130_s28 = scalar_lea.vmem (!%p121_p5), [#allocation3], %s276_s25 }
  0x38   : > { %427 = dma.done.wait (%p517_p8), %s127_s26, 128  }
  0x39   : > { %429 = vsyncadd (%p517_p8), %s127_s26, 4294967168  ;;  %v152_v0 = vlaneseq  ;;  %vm150_vm0 = vcmask 261120   ;;  %v149_v4 = vld [vmem:[%s130_s28] sm:$0xff]  ;;  %vm156_vm1 = vcmask 254976   ;;  %s148_s18 = scalar_lea.vmem [#allocation6], %s276_s25  ;;  %s279_s29 = sshll.u32 %s448_s9, 7 }
  0x3a   : > { %151 = vst.msk [vmem:[#allocation2 + $0x2] sm:$0xff] %vm150_vm0, %v149_v4  ;;  %s189_s27 = sshll.u32 %s148_s18, 4  ;;  %s596_s3 = scalar_lea.hbm %s645_s1, %s279_s29  ;;  %s591_s27 = int_to_ptr.vmem [resolvable:$true] %s189_s27 }
  0x3b   : > { %v153_v1 = vshrl.u32 %v152_v0, 7  ;;  %s175_s4 = scalar_lea.sflag [#allocation5], %s581_s24  ;;  %s374_s5 = scalar_lea.vmem %s591_s27, 128 }
  0x3c   : > { %p375_p8 = scmp.ne.s32.totalorder %s591_s27, %s374_s5  ;;  %p654_p9 = scmp.ne.s32.totalorder %s649_s19, 0 }
  0x3d   : > { %v154_v2 = vsub.s32 0, %v153_v1  ;;  %v160_v3 = vsub.s32 7, %v153_v1  ;;  %s459_s9 = smov [#allocation6]  }
  0x3e   : > { %p376_p11 = pnand %p375_p8, %p654_p9  ;;  %s378_s12 = sshll.u32 %s459_s9, 4  ;;  %s379_s12 = int_to_ptr.vmem [resolvable:$false] %s378_s12 }
  0x3f   : > { %v155_v5 = vrot.slane %v149_v4, %v154_v2  ;;  %v161_v6 = vrot.slane %v149_v4, %v160_v3  ;;  %s380_s13 = scalar_lea.vmem %s379_s12, 256  ;;  %p381_p7 = scmp.lt.s32.totalorder %s591_s27, %s379_s12 }
  0x40   : > { %p377_p0 = pneg %p376_p11  ;;  %p382_p13 = scmp.lt.s32.totalorder %s380_s13, %s374_s5 }
  0x41   : > { %157 = vst.msk [vmem:[#allocation2] sm:$0x3] %vm156_vm1, %v155_v5  ;;  %162 = vst.msk [vmem:[#allocation2 + $0xa] sm:$0x3] %vm156_vm1, %v161_v6  ;;  %v166_v10 = vld [vmem:[#allocation2 + $0x2] sm:$0xff] }
  0x42   : > { %p383_p3 = por %p382_p13, %p381_p7 }
  0x44   : > { %p384_p6 = pnand %p383_p3, %p377_p0 }
  0x48   : > { %v163_v7 = vld [vmem:[#allocation2] sm:$0xff] }
  0x49   : > { %v164_v8 = vld [vmem:[#allocation2 + $0x1] sm:$0xff] }
  0x4a   : > { %v165_v9 = vadd.f32 %v164_v8, %v163_v7  ;;  %v168_v12 = vld [vmem:[#allocation2 + $0x3] sm:$0xff] }
  0x4b   : > { %v170_v14 = vld [vmem:[#allocation2 + $0x4] sm:$0xff] }
  0x4c   : > { %v167_v11 = vadd.f32 %v166_v10, %v165_v9 }
  0x4e   : > { %v169_v13 = vadd.f32 %v168_v12, %v167_v11 }
  0x50   : > { %v171_v15 = vadd.f32 %v170_v14, %v169_v13 }
  0x52   : > { %v172_v16 = vmul.f32 0.2, %v171_v15 }
  0x54   : > { %173 = vst.msk [vmem:[%s148_s18] sm:$0xff] %vm150_vm0, %v172_v16 }
  0x55   : > { %387 = shalt.err (!%p384_p6)
}
  0x56   : > { %s388_s15 = scalar_lea.hbm %s596_s3, 128  ;;  %s392_s22 = scalar_lea.hbm %s645_s1, 256 }
  0x57   : > { %p389_p4 = scmp.ne.s32.totalorder %s596_s3, %s388_s15  ;;  %p393_p1 = scmp.lt.u32.totalorder %s596_s3, %s645_s1 }
  0x58   : > { %p394_p2 = scmp.lt.u32.totalorder %s392_s22, %s388_s15  ;;  %p396_p8 = scmp.lt.u32.totalorder %s388_s15, %s596_s3 }
  0x59   : > { %p390_p10 = pnand %p389_p4, %p654_p9 }
  0x5a   : > { %p395_p5 = por %p394_p2, %p393_p1 }
  0x5b   : > { %p391_p12 = pneg %p390_p10 }
  0x5c   : > { %p397_p11 = por %p396_p8, %p395_p5 }
  0x5e   : > { %p398_p0 = pnand %p397_p11, %p391_p12 }
  0x60   : > { %401 = shalt.err (!%p398_p0)
}
  0x61   : > { %284 = dma.vmem_to_hbm [thread:$0]  (%p654_p9), %s591_s27, 128, %s596_s3, %s175_s4  }
  0x62 PF: > { %s201_s25 = sand.u32 1, %s436_s6   ;;  %p655_p7 = scmp.ne.s32.totalorder %s650_s21, 0 }
  0x63   : > { %p656_p13 = scmp.ge.s32.totalorder %s456_s11, 2  ;;  %s202_s26 = scalar_lea.sflag [#allocation5], %s201_s25 }
  0x65   : > { %p291_p3 = pnand %p656_p13, %p655_p7 }
  0x67   : > { %431 = dma.done.wait (!%p291_p3), %s202_s26, 128  }
  0x68   : > { %433 = vsyncadd (!%p291_p3), %s202_s26, 4294967168  ;;  %s17_s11 = sadd.s32 1, %s456_s11   ;;  %s657_s6 = smov %s440_s7 }
  0x69   : > { %p14_p6 = scmp.ge.s32.totalorder %s17_s11, 4   ;;  %s658_s7 = smov %s444_s8 }
  0x6a   : > { %s659_s8 = smov %s526_s20  ;;  %s660_s9 = smov %s452_s10 }
  0x6b   : > { %s661_s10 = smov %s663_s14  ;;  %16 = sbr.rel (!%p14_p6) target bundleno = 6 (0x6), region = 69 }
  0x72   :  { %207 = vsyncpa [#allocation4], 1 }
  0x73   :  { %209 = vsyncpa [#allocation4 + $0x1], 1 }
  0x74   :  { %210 = vsyncpa [#allocation5], 1 }
  0x75   :  { %212 = vsyncpa [#allocation5 + $0x1], 1 }

</bundles_post_ra>
